<compile_context>
chip_gen: v7x
topology: tpu7x:2x2x1
jax: 0.10.0
libtpu: 0.0.40
codegen_flags: <defaults>
</compile_context>

<pallas_src>
import jax
import jax.numpy as jnp
from jax.experimental import pallas as pl
from jax.experimental.pallas import tpu as pltpu

PACK = 8  # batch elements packed per lane-dense row (sublane quantum)


def emnet_kernel(x8_ref, w1_ref, b1_ref, w2_ref, b2_ref, out_ref):
    # x8:  (TBR, PACK*F)   8 batch elements per row, features contiguous in lanes
    # w1:  (PACK*F, PACK*H) block-diag copies of W1 (resident in VMEM)
    # b1:  (1, PACK*H)
    # w2:  (PACK*H, PACK*O) block-diag copies of W2 (resident)
    # b2:  (1, PACK*O)
    # out: (TBR, PACK*O)   interleaved [mu, (sigma+1)^2] pairs
    # Layer 1 on the MXU: block-diagonal weight applies W1 to all 8 packed
    # elements in one K=128 contraction.
    z1 = jnp.dot(x8_ref[...], w1_ref[...], preferred_element_type=jnp.float32)
    z1 = z1 + b1_ref[...]
    # Sigmoid via the exact identity sigmoid(z) = 0.5*(tanh(z/2)+1): 1 EUP op.
    h = 0.5 * (jnp.tanh(0.5 * z1) + 1.0)
    # Layer 2 + ReLU.
    z2 = jnp.dot(h, w2_ref[...], preferred_element_type=jnp.float32)
    p = jnp.maximum(z2 + b2_ref[...], 0.0)            # (TBR, PACK*O)
    # Even lanes carry mu, odd lanes carry sigma -> (sigma + 1)^2.  Branchless.
    lane = jax.lax.broadcasted_iota(jnp.int32, p.shape, 1)
    out_ref[...] = jnp.where((lane & 1) == 0, p, (p + 1.0) ** 2)


def _round_up(n, m):
    return ((n + m - 1) // m) * m


def emnet_forward(x, w1, b1, w2, b2, *, tb=16384):
    """EMNet.forward for a batch of covariate vectors.

    x: (B, F) float32.  Returns (mu (B, 1), sigma_sq (B, 1)) where
    sigma_sq = (relu_out + 1) ** 2, matching the PyTorch module.

    tb: batch elements per grid step (keep a multiple of 64).  Larger tiles
    amortize the ~0.35 us per-step overhead; VMEM use is ~0.5 KB * tb, well
    under the 32 MiB limit set below, so 16K-64K is fine on v5e/v6e/v7x.
    On v7x prefer a tb giving an even number of grid steps (2 TensorCores).
    """
    B, F = x.shape
    H = w1.shape[1]
    O = w2.shape[1]
    assert O == 2, "EMNet.forward unpacks exactly (mu, sigma)"

    # Pack 8 batch elements per row -> lane-dense (rows, PACK*F) slab.  For a
    # contiguous row-major x this reshape is free (no HBM pass), unlike the
    # v2 wrapper transpose.  Only a tiny (<8 row) pad when B is not 8-aligned.
    B_pad = _round_up(B, PACK)
    if B_pad != B:
        x = jnp.pad(x, ((0, B_pad - B), (0, 0)))
    rows = B_pad // PACK
    x8 = x.reshape(rows, PACK * F)

    # Block-diagonal weights (tiny, stay resident across the whole grid).
    eye = jnp.eye(PACK, dtype=x.dtype)
    w1_blk = jnp.kron(eye, w1.astype(x.dtype))        # (PACK*F, PACK*H) = (128, 256)
    b1_blk = jnp.tile(b1.reshape(1, H), (1, PACK))    # (1, PACK*H)
    w2_blk = jnp.kron(eye, w2.astype(x.dtype))        # (PACK*H, PACK*O) = (256, 16)
    b2_blk = jnp.tile(b2.reshape(1, O), (1, PACK))    # (1, PACK*O)

    # Batch tile in packed rows: multiple of 8 sublanes.  Edge tile is clipped
    # by the grid (no full-tile padding of x).
    tbr = max(8, min(tb // PACK, _round_up(rows, 8)))
    tbr = (tbr // 8) * 8
    n_tiles = pl.cdiv(rows, tbr)

    out8 = pl.pallas_call(
        emnet_kernel,
        out_shape=jax.ShapeDtypeStruct((rows, PACK * O), jnp.float32),
        grid=(n_tiles,),
        in_specs=[
            pl.BlockSpec((tbr, PACK * F), lambda i: (i, 0)),       # x tile: pipelined
            pl.BlockSpec((PACK * F, PACK * H), lambda i: (0, 0)),  # weights: resident
            pl.BlockSpec((1, PACK * H), lambda i: (0, 0)),
            pl.BlockSpec((PACK * H, PACK * O), lambda i: (0, 0)),
            pl.BlockSpec((1, PACK * O), lambda i: (0, 0)),
        ],
        out_specs=pl.BlockSpec((tbr, PACK * O), lambda i: (i, 0)),
        compiler_params=pltpu.CompilerParams(
            dimension_semantics=("parallel",),     # shard tiles across TCs on v7x
            vmem_limit_bytes=32 * 1024 * 1024,     # headroom for large tb, all gens
        ),
        cost_estimate=pl.CostEstimate(
            flops=2 * B_pad * (F * H + H * O),
            transcendentals=B_pad * H,             # one tanh per hidden unit
            bytes_accessed=4 * (B_pad * F + B_pad * O
                                + (PACK * F) * (PACK * H) + PACK * H
                                + (PACK * H) * (PACK * O) + PACK * O),
        ),
    )(x8, w1_blk, b1_blk, w2_blk, b2_blk)

    params = out8.reshape(B_pad, O)[:B]            # free reshape + slice off pad
    mu = params[:, 0:1]
    sigma_sq = params[:, 1:2]
    return mu, sigma_sq


def init_linear(key, fan_in, fan_out):
    """Deterministic init mimicking nn.Linear (uniform +/- 1/sqrt(fan_in))."""
    kw, kb = jax.random.split(key)
    bound = 1.0 / jnp.sqrt(fan_in)
    w = jax.random.uniform(kw, (fan_in, fan_out), jnp.float32, -bound, bound)
    b = jax.random.uniform(kb, (1, fan_out), jnp.float32, -bound, bound)
    return w, b


def reference_forward(x, w1, b1, w2, b2):
    """Pure-JAX reference matching the PyTorch forward applied per row."""
    h = jax.nn.sigmoid(x @ w1 + b1)
    p = jnp.maximum(h @ w2 + b2, 0.0)
    mu = p[:, 0:1]
    sigma_sq = (p[:, 1:2] + 1.0) ** 2
    return mu, sigma_sq


# TODO(synk): the EM-specific methods (log_q, grad_mu_xi, grad_sigma_xi, loss,
# predict) depend on global feat_params, NaN-driven per-row control flow and
# Normal sampling; only forward() is implemented as a Pallas kernel.

if __name__ == "__main__":
    # Small shapes consistent with the module: features=16, hidden=32, out=2.
    # B=1000 with tb=512 exercises a 2-step pipelined grid (even step count for
    # v7x) including a clipped edge tile and an 8-row packing pad.
    B, FEATURES, HIDDEN, OUT = 1000, 16, 32, 2

    key = jax.random.PRNGKey(0)
    kx, k1, k2 = jax.random.split(key, 3)

    x = jax.random.normal(kx, (B, FEATURES), jnp.float32)
    w1, b1 = init_linear(k1, FEATURES, HIDDEN)
    w2, b2 = init_linear(k2, HIDDEN, OUT)

    fwd = jax.jit(emnet_forward, static_argnames=("tb",))
    mu, sigma_sq = fwd(x, w1, b1, w2, b2, tb=512)
    mu, sigma_sq = jax.block_until_ready((mu, sigma_sq))

    mu_ref, sig_ref = reference_forward(x, w1, b1, w2, b2)
    assert jnp.allclose(mu, mu_ref, atol=1e-5), "mu mismatch"
    assert jnp.allclose(sigma_sq, sig_ref, atol=1e-5), "sigma mismatch"

    print("KERNEL_OK")
</pallas_src>

<mosaic_0001>
module attributes {stable_mosaic.version = 11 : i64} {
  func.func @emnet_kernel(%arg0: i32, %arg1: memref<64x128xf32, #tpu.memory_space<vmem>>, %arg2: memref<128x256xf32, #tpu.memory_space<vmem>>, %arg3: memref<1x256xf32, #tpu.memory_space<vmem>>, %arg4: memref<256x16xf32, #tpu.memory_space<vmem>>, %arg5: memref<1x16xf32, #tpu.memory_space<vmem>>, %arg6: memref<64x16xf32, #tpu.memory_space<vmem>>) attributes {dimension_semantics = [#tpu.dimension_semantics<parallel>], iteration_bounds = array<i64: 2>, scalar_prefetch = 0 : i64, scratch_operands = 0 : i64, tpu.core_type = #tpu.core_type<tc>, window_params = [{transform_indices = @transform_0, window_bounds = array<i64: 64, 128>}, {pipeline_mode = #tpu.pipeline_mode<synchronous>, transform_indices = @transform_1, window_bounds = array<i64: 128, 256>}, {pipeline_mode = #tpu.pipeline_mode<synchronous>, transform_indices = @transform_2, window_bounds = array<i64: 1, 256>}, {pipeline_mode = #tpu.pipeline_mode<synchronous>, transform_indices = @transform_3, window_bounds = array<i64: 256, 16>}, {pipeline_mode = #tpu.pipeline_mode<synchronous>, transform_indices = @transform_4, window_bounds = array<i64: 1, 16>}, {transform_indices = @transform_5, window_bounds = array<i64: 64, 16>}]} {
    %c0 = arith.constant 0 : index
    %c0_0 = arith.constant 0 : index
    %0 = vector.load %arg1[%c0, %c0_0] : memref<64x128xf32, #tpu.memory_space<vmem>>, vector<64x128xf32>
    %c0_1 = arith.constant 0 : index
    %c0_2 = arith.constant 0 : index
    %1 = vector.load %arg2[%c0_1, %c0_2] : memref<128x256xf32, #tpu.memory_space<vmem>>, vector<128x256xf32>
    %cst = arith.constant dense<0.000000e+00> : vector<64x256xf32>
    %2 = tpu.matmul %0, %1, %cst {dimension_numbers = #tpu.dot_dimension_numbers<[1], [0], [0], [1], [0, 0, 1, 1], [], []>} : vector<64x128xf32>, vector<128x256xf32>, vector<64x256xf32> -> vector<64x256xf32>
    %c0_3 = arith.constant 0 : index
    %c0_4 = arith.constant 0 : index
    %3 = vector.load %arg3[%c0_3, %c0_4] : memref<1x256xf32, #tpu.memory_space<vmem>>, vector<1x256xf32>
    %4 = vector.broadcast %3 : vector<1x256xf32> to vector<64x256xf32>
    %5 = arith.addf %2, %4 : vector<64x256xf32>
    %cst_5 = arith.constant 5.000000e-01 : f32
    %6 = vector.broadcast %cst_5 : f32 to vector<64x256xf32>
    %7 = arith.mulf %6, %5 : vector<64x256xf32>
    %8 = math.tanh %7 : vector<64x256xf32>
    %cst_6 = arith.constant 1.000000e+00 : f32
    %9 = vector.broadcast %cst_6 : f32 to vector<64x256xf32>
    %10 = arith.addf %8, %9 : vector<64x256xf32>
    %cst_7 = arith.constant 5.000000e-01 : f32
    %11 = vector.broadcast %cst_7 : f32 to vector<64x256xf32>
    %12 = arith.mulf %11, %10 : vector<64x256xf32>
    %c0_8 = arith.constant 0 : index
    %c0_9 = arith.constant 0 : index
    %13 = vector.load %arg4[%c0_8, %c0_9] : memref<256x16xf32, #tpu.memory_space<vmem>>, vector<256x16xf32>
    %cst_10 = arith.constant dense<0.000000e+00> : vector<64x16xf32>
    %14 = tpu.matmul %12, %13, %cst_10 {dimension_numbers = #tpu.dot_dimension_numbers<[1], [0], [0], [1], [0, 0, 1, 1], [], []>} : vector<64x256xf32>, vector<256x16xf32>, vector<64x16xf32> -> vector<64x16xf32>
    %c0_11 = arith.constant 0 : index
    %c0_12 = arith.constant 0 : index
    %15 = vector.load %arg5[%c0_11, %c0_12] : memref<1x16xf32, #tpu.memory_space<vmem>>, vector<1x16xf32>
    %16 = vector.broadcast %15 : vector<1x16xf32> to vector<64x16xf32>
    %17 = arith.addf %14, %16 : vector<64x16xf32>
    %cst_13 = arith.constant 0.000000e+00 : f32
    %18 = vector.broadcast %cst_13 : f32 to vector<64x16xf32>
    %19 = arith.maximumf %17, %18 : vector<64x16xf32>
    %20 = tpu.iota {dimensions = array<i32: 1>} : vector<64x16xi32>
    %c1_i32 = arith.constant 1 : i32
    %21 = vector.broadcast %c1_i32 : i32 to vector<64x16xi32>
    %22 = arith.andi %20, %21 : vector<64x16xi32>
    %c0_i32 = arith.constant 0 : i32
    %23 = vector.broadcast %c0_i32 : i32 to vector<64x16xi32>
    %24 = arith.cmpi eq, %22, %23 : vector<64x16xi32>
    %cst_14 = arith.constant 1.000000e+00 : f32
    %25 = vector.broadcast %cst_14 : f32 to vector<64x16xf32>
    %26 = arith.addf %19, %25 : vector<64x16xf32>
    %27 = arith.mulf %26, %26 : vector<64x16xf32>
    %28 = arith.select %24, %19, %27 : vector<64x16xi1>, vector<64x16xf32>
    %c0_15 = arith.constant 0 : index
    %c0_16 = arith.constant 0 : index
    %29 = vector.load %arg6[%c0_15, %c0_16] : memref<64x16xf32, #tpu.memory_space<vmem>>, vector<64x16xf32>
    tpu.vector_store %arg6[%c0_15, %c0_16], %28 {strides = array<i32>} : memref<64x16xf32, #tpu.memory_space<vmem>>, vector<64x16xf32>,
    return
  }
  func.func @transform_0(%arg0: i32) -> (i32, i32) {
    %c0_i32 = arith.constant 0 : i32
    %c0_i32_0 = arith.constant 0 : i32
    return %arg0, %c0_i32 : i32, i32
  }
  func.func @transform_1(%arg0: i32) -> (i32, i32) {
    %c0_i32 = arith.constant 0 : i32
    %c0_i32_0 = arith.constant 0 : i32
    %c0_i32_1 = arith.constant 0 : i32
    return %c0_i32, %c0_i32_0 : i32, i32
  }
  func.func @transform_2(%arg0: i32) -> (i32, i32) {
    %c0_i32 = arith.constant 0 : i32
    %c0_i32_0 = arith.constant 0 : i32
    %c0_i32_1 = arith.constant 0 : i32
    return %c0_i32, %c0_i32_0 : i32, i32
  }
  func.func @transform_3(%arg0: i32) -> (i32, i32) {
    %c0_i32 = arith.constant 0 : i32
    %c0_i32_0 = arith.constant 0 : i32
    %c0_i32_1 = arith.constant 0 : i32
    return %c0_i32, %c0_i32_0 : i32, i32
  }
  func.func @transform_4(%arg0: i32) -> (i32, i32) {
    %c0_i32 = arith.constant 0 : i32
    %c0_i32_0 = arith.constant 0 : i32
    %c0_i32_1 = arith.constant 0 : i32
    return %c0_i32, %c0_i32_0 : i32, i32
  }
  func.func @transform_5(%arg0: i32) -> (i32, i32) {
    %c0_i32 = arith.constant 0 : i32
    %c0_i32_0 = arith.constant 0 : i32
    return %arg0, %c0_i32 : i32, i32
  }
}

</mosaic_0001>

<bundles_post_ra>
// kernel: emnet_forward.1
= control target key start
LH: loop header
LB: loop body
LE: loop exit
PB: predicated region body
PF: predicated region fallthrough
CT: control target
= control target key end

     0   :  { %s914_s18 = smov 0   ;;  %s1222_s0 = inlined_call_operand.vmem [shape: f32[125,128], index: 0, kind: input, shape index: {}]   ;;  %s1223_s1 = inlined_call_operand.vmem [shape: f32[128,256], index: 1, kind: input, shape index: {}]   ;;  %s1224_s2 = inlined_call_operand.vmem [shape: f32[1,256], index: 2, kind: input, shape index: {}]   ;;  %s1225_s3 = inlined_call_operand.vmem [shape: f32[256,16], index: 3, kind: input, shape index: {}]   ;;  %s1226_s4 = inlined_call_operand.vmem [shape: f32[1,16], index: 4, kind: input, shape index: {}]   ;;  %s1227_s5 = inlined_call_operand.vmem [shape: f32[125,16], index: 5, kind: output, shape index: {}]  }
   0x1 LB: > { %s702_s19 = sadd.s32 4294967295, %s881_s18   ;;  %p706_p0 = scmp.ge.s32.totalorder %s881_s18, 1  ;;  %s881_s18 = sphi %s914_s18, %s15_s18  }
   0x2   : > { %p188_p1 = scmp.lt.s32.totalorder %s881_s18, 3 }
   0x4   : > { %p189_p2 = pnand %p706_p0, %p188_p1 }
   0x5   : > { %v237_v0 = vld [vmem:[%s1223_s1 + $0x8] sm:$0xff] (!%p189_p2)  ;;  %v239_v1 = vld [vmem:[%s1223_s1 + $0x18] sm:$0xff] (!%p189_p2)  ;;  %v236_v2 = vld [vmem:[%s1223_s1] sm:$0xff] (!%p189_p2)  ;;  %v883_v7 = vmov (!%p189_p2), 0.0   ;;  %s1006_s28 = sshll.u32 (!%p189_p2), %s702_s19, 3  ;;  %vm637_vm1 = vcmask (!%p189_p2), 130048  }
   0x6   : > { %192 = sbr.rel (%p189_p2) target bundleno = 526 (0x20e), region = 40  ;;  %v770_v3 = vpack.c.bf16 (!%p189_p2), %v239_v1, %v237_v0  ;;  %v238_v4 = vld [vmem:[%s1223_s1 + $0x10] sm:$0xff] (!%p189_p2)  ;;  %v241_v5 = vld [vmem:[%s1223_s1 + $0x28] sm:$0xff] (!%p189_p2)  ;;  %v243_v6 = vld [vmem:[%s1223_s1 + $0x38] sm:$0xff] (!%p189_p2)  ;;  %344 = vmatprep.mubr.f32.mxu0 (!%p189_p2), %v883_v7  ;;  %p217_p3 = scmp.lt.s32.totalorder (!%p189_p2), %s1006_s28, 15 }
   0x7   : > { %v772_v8 = vpack.c.bf16 (!%p189_p2), %v238_v4, %v236_v2  ;;  %v774_v9 = vpack.c.bf16 (!%p189_p2), %v243_v6, %v241_v5  ;;  %v240_v10 = vld [vmem:[%s1223_s1 + $0x20] sm:$0xff] (!%p189_p2)  ;;  %v242_v11 = vld [vmem:[%s1223_s1 + $0x30] sm:$0xff] (!%p189_p2)  ;;  %v245_v12 = vld [vmem:[%s1223_s1 + $0x48] sm:$0xff] (!%p189_p2) }
   0x8   : > { %771 = vmatprep.subr.bf16.mxu0 (!%p189_p2), %v770_v3  ;;  %v247_v13 = vld [vmem:[%s1223_s1 + $0x58] sm:$0xff] (!%p189_p2)  ;;  %v776_v14 = vpack.c.bf16 (!%p189_p2), %v242_v11, %v240_v10  ;;  %v244_v16 = vld [vmem:[%s1223_s1 + $0x40] sm:$0xff] (!%p189_p2)  ;;  %v246_v17 = vld [vmem:[%s1223_s1 + $0x50] sm:$0xff] (!%p189_p2) }
   0x9   : > { %773 = vmatpush1.bf16.msra.mxu0 (!%p189_p2), %v772_v8  ;;  %v778_v15 = vpack.c.bf16 (!%p189_p2), %v247_v13, %v245_v12  ;;  %v249_v18 = vld [vmem:[%s1223_s1 + $0x68] sm:$0xff] (!%p189_p2)  ;;  %v251_v19 = vld [vmem:[%s1223_s1 + $0x78] sm:$0xff] (!%p189_p2)  ;;  %v780_v20 = vpack.c.bf16 (!%p189_p2), %v246_v17, %v244_v16  ;;  %v248_v22 = vld [vmem:[%s1223_s1 + $0x60] sm:$0xff] (!%p189_p2) }
   0xa   : > { %775 = vmatprep.subr.bf16.mxu0 (!%p189_p2), %v774_v9  ;;  %v782_v21 = vpack.c.bf16 (!%p189_p2), %v251_v19, %v249_v18  ;;  %v250_v23 = vld [vmem:[%s1223_s1 + $0x70] sm:$0xff] (!%p189_p2)  ;;  %v253_v24 = vld [vmem:[%s1223_s1 + $0x88] sm:$0xff] (!%p189_p2)  ;;  %v255_v25 = vld [vmem:[%s1223_s1 + $0x98] sm:$0xff] (!%p189_p2) }
   0xb   : > { %v784_v26 = vpack.c.bf16 (!%p189_p2), %v250_v23, %v248_v22  ;;  %v252_v27 = vld [vmem:[%s1223_s1 + $0x80] sm:$0xff] (!%p189_p2)  ;;  %v254_v28 = vld [vmem:[%s1223_s1 + $0x90] sm:$0xff] (!%p189_p2)  ;;  %v257_v29 = vld [vmem:[%s1223_s1 + $0xa8] sm:$0xff] (!%p189_p2)  ;;  %v786_v30 = vpack.c.bf16 (!%p189_p2), %v255_v25, %v253_v24 }
   0xc   : > { %v259_v31 = vld [vmem:[%s1223_s1 + $0xb8] sm:$0xff] (!%p189_p2)  ;;  %v473_v32 = vld [vmem:[%s1225_s3 + $0x80] sm:$0xff] (!%p189_p2)  ;;  %v474_v33 = vld [vmem:[%s1225_s3 + $0x88] sm:$0xff] (!%p189_p2)  ;;  %v788_v42 = vpack.c.bf16 (!%p189_p2), %v254_v28, %v252_v27 }
   0xd   : > { %777 = vmatpush1.bf16.msra.mxu0 %v776_v14  ;;  %v802_v34 = vpack.c.bf16 %v474_v33, %v473_v32  ;;  %v457_v35 = vld [vmem:[%s1225_s3] sm:$0xff]  ;;  %v458_v36 = vld [vmem:[%s1225_s3 + $0x8] sm:$0xff]  ;;  %v475_v37 = vld [vmem:[%s1225_s3 + $0x90] sm:$0xff]  ;;  %v790_v46 = vpack.c.bf16 %v259_v31, %v257_v29  ;;  %s1231_s28 = smov (!%p217_p3, %s1006_s28), 15 }
   0xe   : > { %779 = vmatprep.subr.bf16.mxu0 %v778_v15  ;;  %v804_v38 = vpack.c.bf16 %v458_v36, %v457_v35  ;;  %v476_v39 = vld [vmem:[%s1225_s3 + $0x98] sm:$0xff]  ;;  %v459_v40 = vld [vmem:[%s1225_s3 + $0x10] sm:$0xff]  ;;  %v477_v44 = vld [vmem:[%s1225_s3 + $0xa0] sm:$0xff]  ;;  %s708_s14 = sshll.u32 %s1231_s28, 3 }
   0xf   : > { %v460_v41 = vld [vmem:[%s1225_s3 + $0x18] sm:$0xff]  ;;  %803 = vmatprep.subr.bf16.mxu1 %v802_v34  ;;  %v806_v43 = vpack.c.bf16 %v476_v39, %v475_v37  ;;  %v478_v45 = vld [vmem:[%s1225_s3 + $0xa8] sm:$0xff]  ;;  %v256_v47 = vld [vmem:[%s1223_s1 + $0xa0] sm:$0xff]  ;;  %s220_s17 = scalar_lea.vmem %s1222_s0, %s708_s14  ;;  %s1179_s22 = scalar_lea.vmem %s1227_s5, %s708_s14 }
  0x10   : > { %v258_v48 = vld [vmem:[%s1223_s1 + $0xb0] sm:$0xff]  ;;  %v261_v49 = vld [vmem:[%s1223_s1 + $0xc8] sm:$0xff]  ;;  %805 = vmatpush3.bf16.msra.mxu1 %v804_v38  ;;  %v808_v50 = vpack.c.bf16 %v460_v41, %v459_v40  ;;  %v263_v51 = vld [vmem:[%s1223_s1 + $0xd8] sm:$0xff]  ;;  %v810_v52 = vpack.c.bf16 %v478_v45, %v477_v44  ;;  %v270_v41 = vlaneseq }
  0x11   : > { %781 = vmatpush1.bf16.msra.mxu0 %v780_v20  ;;  %807 = vmatprep.subr.bf16.mxu1 %v806_v43  ;;  %v461_v53 = vld [vmem:[%s1225_s3 + $0x20] sm:$0xff]  ;;  %v462_v54 = vld [vmem:[%s1225_s3 + $0x28] sm:$0xff]  ;;  %v792_v55 = vpack.c.bf16 %v258_v48, %v256_v47  ;;  %v794_v56 = vpack.c.bf16 %v263_v51, %v261_v49  ;;  %v262_v58 = vld [vmem:[%s1223_s1 + $0xd0] sm:$0xff] }
  0x12   : > { %783 = vmatprep.subr.bf16.mxu0 %v782_v21  ;;  %v260_v57 = vld [vmem:[%s1223_s1 + $0xc0] sm:$0xff]  ;;  %v812_v59 = vpack.c.bf16 %v462_v54, %v461_v53  ;;  %v265_v60 = vld [vmem:[%s1223_s1 + $0xe8] sm:$0xff]  ;;  %v267_v61 = vld [vmem:[%s1223_s1 + $0xf8] sm:$0xff] }
  0x13   : > { %v796_v62 = vpack.c.bf16 %v262_v58, %v260_v57  ;;  %v798_v63 = vpack.c.bf16 %v267_v61, %v265_v60  ;;  %v264_v0 = vld [vmem:[%s1223_s1 + $0xe0] sm:$0xff]  ;;  %v266_v1 = vld [vmem:[%s1223_s1 + $0xf0] sm:$0xff]  ;;  %v229_v4 = vld [vmem:[%s220_s17 + $0x8] sm:$0xff] }
  0x14   : > { %809 = vmatpush3.bf16.msra.mxu1 %v808_v50  ;;  %v800_v2 = vpack.c.bf16 %v266_v1, %v264_v0  ;;  %v228_v3 = vld [vmem:[%s220_s17] sm:$0xff]  ;;  %v230_v5 = vld [vmem:[%s220_s17 + $0x10] sm:$0xff]  ;;  %v231_v6 = vld [vmem:[%s220_s17 + $0x18] sm:$0xff] }
  0x15   : > { %785 = vmatpush1.bf16.msra.mxu0 %v784_v26  ;;  %811 = vmatprep.subr.bf16.mxu1 %v810_v52  ;;  %v232_v8 = vld [vmem:[%s220_s17 + $0x20] sm:$0xff]  ;;  %v233_v9 = vld [vmem:[%s220_s17 + $0x28] sm:$0xff]  ;;  %v234_v10 = vld [vmem:[%s220_s17 + $0x30] sm:$0xff] }
  0x16   : > { %787 = vmatprep.subr.bf16.mxu0 %v786_v30  ;;  %v235_v11 = vld [vmem:[%s220_s17 + $0x38] sm:$0xff]  ;;  %v479_v12 = vld [vmem:[%s1225_s3 + $0xb0] sm:$0xff]  ;;  %v481_v17 = vld [vmem:[%s1225_s3 + $0xc0] sm:$0xff] }
  0x17   : > { %v480_v13 = vld [vmem:[%s1225_s3 + $0xb8] sm:$0xff]  ;;  %v463_v15 = vld [vmem:[%s1225_s3 + $0x30] sm:$0xff]  ;;  %v482_v18 = vld [vmem:[%s1225_s3 + $0xc8] sm:$0xff] }
  0x18   : > { %813 = vmatpush3.bf16.msra.mxu1 %v812_v59  ;;  %v814_v14 = vpack.c.bf16 %v480_v13, %v479_v12  ;;  %v464_v16 = vld [vmem:[%s1225_s3 + $0x38] sm:$0xff]  ;;  %v818_v19 = vpack.c.bf16 %v482_v18, %v481_v17  ;;  %v465_v20 = vld [vmem:[%s1225_s3 + $0x40] sm:$0xff]  ;;  %v466_v21 = vld [vmem:[%s1225_s3 + $0x48] sm:$0xff] }
  0x19   : > { %789 = vmatpush1.bf16.msra.mxu0 %v788_v42  ;;  %v820_v22 = vpack.c.bf16 %v466_v21, %v465_v20  ;;  %v483_v23 = vld [vmem:[%s1225_s3 + $0xd0] sm:$0xff]  ;;  %v484_v24 = vld [vmem:[%s1225_s3 + $0xd8] sm:$0xff]  ;;  %v485_v29 = vld [vmem:[%s1225_s3 + $0xe0] sm:$0xff]  ;;  %v271_v42 = vshrl.u32 %v270_v41, 7 }
  0x1a   : > { %791 = vmatprep.subr.bf16.mxu0 %v790_v46  ;;  %815 = vmatprep.subr.bf16.mxu1 %v814_v14  ;;  %v822_v25 = vpack.c.bf16 %v484_v24, %v483_v23  ;;  %v467_v26 = vld [vmem:[%s1225_s3 + $0x50] sm:$0xff]  ;;  %v468_v27 = vld [vmem:[%s1225_s3 + $0x58] sm:$0xff]  ;;  %v486_v30 = vld [vmem:[%s1225_s3 + $0xe8] sm:$0xff] }
  0x1b   : > { %v824_v28 = vpack.c.bf16 %v468_v27, %v467_v26  ;;  %v826_v31 = vpack.c.bf16 %v486_v30, %v485_v29  ;;  %v469_v32 = vld [vmem:[%s1225_s3 + $0x60] sm:$0xff]  ;;  %v470_v33 = vld [vmem:[%s1225_s3 + $0x68] sm:$0xff]  ;;  %v487_v35 = vld [vmem:[%s1225_s3 + $0xf0] sm:$0xff]  ;;  %v272_v43 = vsub.s32 0, %v271_v42  ;;  %v276_v45 = vsub.s32 1, %v271_v42 }
  0x1c   : > { %v828_v34 = vpack.c.bf16 %v470_v33, %v469_v32  ;;  %v488_v36 = vld [vmem:[%s1225_s3 + $0xf8] sm:$0xff]  ;;  %v471_v38 = vld [vmem:[%s1225_s3 + $0x70] sm:$0xff]  ;;  %v268_v44 = vld [vmem:[%s1224_s2] sm:$0x3] }
  0x1d   : > { %793 = vmatpush1.bf16.msra.mxu0 %v792_v55  ;;  %v830_v37 = vpack.c.bf16 %v488_v36, %v487_v35  ;;  %v472_v39 = vld [vmem:[%s1225_s3 + $0x78] sm:$0xff]  ;;  %v1142_v46 = vrot.slane %v268_v44, %v272_v43  ;;  %v1144_v47 = vrot.slane %v268_v44, %v276_v45 }
  0x1e   : > { %795 = vmatprep.subr.bf16.mxu0 %v794_v56  ;;  %v832_v40 = vpack.c.bf16 %v472_v39, %v471_v38 }
  0x21   : > { %797 = vmatpush1.bf16.msra.mxu0 %v796_v62 }
  0x22   : > { %799 = vmatprep.subr.bf16.mxu0 %v798_v63 }
  0x25   : > { %801 = vmatpush1.bf16.msra.mxu0 %v800_v2 }
  0x28   : > { %345 = vmatmul.mubr.f32.vlgmr.msra.gmra.mrb[0].mxu0 %v228_v3 }
  0x29   : > { %350 = vmatprep.mubr.f32.mxu0 %v883_v7 }
  0x2c   : > { %351 = vmatmul.mubr.f32.gmra.mrb[2].mxu0 %v229_v4 }
  0x2d   : > { %356 = vmatprep.mubr.f32.mxu0 %v883_v7 }
  0x30   : > { %357 = vmatmul.mubr.f32.gmra.mrb[4].mxu0 %v230_v5 }
  0x31   : > { %362 = vmatprep.mubr.f32.mxu0 %v883_v7 }
  0x34   : > { %363 = vmatmul.mubr.f32.gmra.mrb[6].mxu0 %v231_v6 }
  0x35   : > { %368 = vmatprep.mubr.f32.mxu0 %v883_v7 }
  0x38   : > { %369 = vmatmul.mubr.f32.gmra.mrb[8].mxu0 %v232_v8 }
  0x39   : > { %374 = vmatprep.mubr.f32.mxu0 %v883_v7 }
  0x3c   : > { %375 = vmatmul.mubr.f32.gmra.mrb[10].mxu0 %v233_v9 }
  0x3d   : > { %380 = vmatprep.mubr.f32.mxu0 %v883_v7 }
  0x40   : > { %381 = vmatmul.mubr.f32.gmra.mrb[12].mxu0 %v234_v10 }
  0x41   : > { %386 = vmatprep.mubr.f32.mxu0 %v883_v7  ;;  %v816_v7 = vpack.c.bf16 %v464_v16, %v463_v15 }
  0x43   : > { %817 = vmatpush3.bf16.msra.mxu1 %v816_v7 }
  0x44   : > { %387 = vmatmul.mubr.f32.gmra.mrb[14].mxu0 %v235_v11  ;;  %819 = vmatprep.subr.bf16.mxu1 %v818_v19 }
  0x47   : > { %821 = vmatpush3.bf16.msra.mxu1 %v820_v22 }
  0x48   : > { %823 = vmatprep.subr.bf16.mxu1 %v822_v25 }
  0x4b   : > { %825 = vmatpush3.bf16.msra.mxu1 %v824_v28 }
  0x4c   : > { %827 = vmatprep.subr.bf16.mxu1 %v826_v31 }
  0x4f   : > { %829 = vmatpush3.bf16.msra.mxu1 %v828_v34 }
  0x50   : > { %831 = vmatprep.subr.bf16.mxu1 %v830_v37 }
  0x53   : > { %833 = vmatpush3.bf16.msra.mxu1 %v832_v40 }
  0xfb   : > { %v346_v48 = vpop.f32.mrb[0].mxu0 }
  0xfc   : > { %v347_v49 = vadd.f32 %v346_v48, %v1142_v46  ;;  %v348_v50 = vpop.f32.mrb[1].mxu0 }
  0xfd   : > { %v349_v51 = vadd.f32 %v348_v50, %v1144_v47 }
  0xfe   : > { %v393_v52 = vmul.f32 0.5, %v347_v49 }
  0xff   : > { %v394_v53 = vmul.f32 0.5, %v349_v51  ;;  %v352_v54 = vpop.f32.mrb[2].mxu0 }
 0x100   : > { %843 = vtanh.f32 %v393_v52  ;;  %v353_v55 = vadd.f32 %v352_v54, %v1142_v46  ;;  %v354_v56 = vpop.f32.mrb[3].mxu0 }
 0x101   : > { %845 = vtanh.f32 %v394_v53  ;;  %v355_v57 = vadd.f32 %v354_v56, %v1144_v47 }
 0x102   : > { %v395_v58 = vmul.f32 0.5, %v353_v55 }
 0x103   : > { %v396_v59 = vmul.f32 0.5, %v355_v57  ;;  %v358_v60 = vpop.f32.mrb[4].mxu0 }
 0x104   : > { %847 = vtanh.f32 %v395_v58  ;;  %v359_v61 = vadd.f32 %v358_v60, %v1142_v46  ;;  %v360_v62 = vpop.f32.mrb[5].mxu0 }
 0x105   : > { %849 = vtanh.f32 %v396_v59  ;;  %v361_v63 = vadd.f32 %v360_v62, %v1144_v47 }
 0x106   : > { %v397_v0 = vmul.f32 0.5, %v359_v61 }
 0x107   : > { %v398_v1 = vmul.f32 0.5, %v361_v63  ;;  %v364_v2 = vpop.f32.mrb[6].mxu0 }
 0x108   : > { %851 = vtanh.f32 %v397_v0  ;;  %v365_v3 = vadd.f32 %v364_v2, %v1142_v46  ;;  %v366_v4 = vpop.f32.mrb[7].mxu0 }
 0x109   : > { %853 = vtanh.f32 %v398_v1  ;;  %v367_v5 = vadd.f32 %v366_v4, %v1144_v47 }
 0x10a   : > { %v844_v6 = vpop.eup %843  ;;  %v399_v8 = vmul.f32 0.5, %v365_v3 }
 0x10b   : > { %v846_v9 = vpop.eup %845  ;;  %v425_v10 = vadd.f32 1.0, %v844_v6  ;;  %v400_v11 = vmul.f32 0.5, %v367_v5  ;;  %v370_v12 = vpop.f32.mrb[8].mxu0 }
 0x10c   : > { %855 = vtanh.f32 %v399_v8  ;;  %v371_v13 = vadd.f32 %v370_v12, %v1142_v46  ;;  %v372_v14 = vpop.f32.mrb[9].mxu0  ;;  %v426_v15 = vadd.f32 1.0, %v846_v9 }
 0x10d   : > { %857 = vtanh.f32 %v400_v11  ;;  %v373_v16 = vadd.f32 %v372_v14, %v1144_v47  ;;  %v441_v23 = vmul.f32 0.5, %v425_v10 }
 0x10e   : > { %v848_v7 = vpop.eup %847  ;;  %v401_v17 = vmul.f32 0.5, %v371_v13  ;;  %v442_v18 = vmul.f32 0.5, %v426_v15 }
 0x10f   : > { %v850_v19 = vpop.eup %849  ;;  %v427_v20 = vadd.f32 1.0, %v848_v7  ;;  %v402_v21 = vmul.f32 0.5, %v373_v16  ;;  %v376_v22 = vpop.f32.mrb[10].mxu0 }
 0x110   : > { %v428_v24 = vadd.f32 1.0, %v850_v19  ;;  %859 = vtanh.f32 %v401_v17  ;;  %v377_v25 = vadd.f32 %v376_v22, %v1142_v46  ;;  %v378_v26 = vpop.f32.mrb[11].mxu0  ;;  %560 = vmatprep.mubr.f32.mxu1 %v442_v18  ;;  %v1165_v18 = vld [vmem:[%s1226_s4] ss:$0 sm:$0xff] }
 0x111   : > { %861 = vtanh.f32 %v402_v21  ;;  %v379_v27 = vadd.f32 %v378_v26, %v1144_v47  ;;  %561 = vmatmul.mubr.f32.vlgmr.msra.gmra.mrb[0].mxu1 %v441_v23  ;;  %v443_v35 = vmul.f32 0.5, %v427_v20  ;;  %v610_v20 = vand.u32 127, %v270_v41 }
 0x112   : > { %v852_v28 = vpop.eup %851  ;;  %v403_v29 = vmul.f32 0.5, %v377_v25  ;;  %v444_v30 = vmul.f32 0.5, %v428_v24 }
 0x113   : > { %v854_v31 = vpop.eup %853  ;;  %v429_v32 = vadd.f32 1.0, %v852_v28  ;;  %v404_v33 = vmul.f32 0.5, %v379_v27  ;;  %v382_v34 = vpop.f32.mrb[12].mxu0  ;;  %v611_v24 = vand.u32 1, %v610_v20 }
 0x114   : > { %v430_v36 = vadd.f32 1.0, %v854_v31  ;;  %863 = vtanh.f32 %v403_v29  ;;  %v383_v37 = vadd.f32 %v382_v34, %v1142_v46  ;;  %v384_v38 = vpop.f32.mrb[13].mxu0  ;;  %565 = vmatprep.mubr.f32.mxu1 %v444_v30 }
 0x115   : > { %865 = vtanh.f32 %v404_v33  ;;  %v385_v39 = vadd.f32 %v384_v38, %v1144_v47  ;;  %566 = vmatmul.mubr.f32.gmra.mrb[2].mxu1 %v443_v35  ;;  %v445_v50 = vmul.f32 0.5, %v429_v32  ;;  %vm1170_vm0 = vcmp.eq.s32.totalorder %v611_v24, 0 }
 0x116   : > { %v856_v40 = vpop.eup %855  ;;  %v405_v42 = vmul.f32 0.5, %v383_v37  ;;  %v446_v43 = vmul.f32 0.5, %v430_v36 }
 0x117   : > { %v858_v44 = vpop.eup %857  ;;  %v431_v45 = vadd.f32 1.0, %v856_v40  ;;  %v406_v48 = vmul.f32 0.5, %v385_v39  ;;  %v388_v49 = vpop.f32.mrb[14].mxu0 }
 0x118   : > { %v432_v51 = vadd.f32 1.0, %v858_v44  ;;  %867 = vtanh.f32 %v405_v42  ;;  %v389_v52 = vadd.f32 %v388_v49, %v1142_v46  ;;  %v390_v53 = vpop.f32.mrb[15].mxu0  ;;  %570 = vmatprep.mubr.f32.mxu1 %v446_v43 }
 0x119   : > { %869 = vtanh.f32 %v406_v48  ;;  %v391_v54 = vadd.f32 %v390_v53, %v1144_v47  ;;  %571 = vmatmul.mubr.f32.gmra.mrb[4].mxu1 %v445_v50  ;;  %v447_v61 = vmul.f32 0.5, %v431_v45 }
 0x11a   : > { %v860_v55 = vpop.eup %859  ;;  %v407_v56 = vmul.f32 0.5, %v389_v52  ;;  %v448_v57 = vmul.f32 0.5, %v432_v51 }
 0x11b   : > { %v862_v58 = vpop.eup %861  ;;  %v433_v59 = vadd.f32 1.0, %v860_v55  ;;  %v408_v60 = vmul.f32 0.5, %v391_v54 }
 0x11c   : > { %v434_v62 = vadd.f32 1.0, %v862_v58  ;;  %871 = vtanh.f32 %v407_v56  ;;  %575 = vmatprep.mubr.f32.mxu1 %v448_v57 }
 0x11d   : > { %873 = vtanh.f32 %v408_v60  ;;  %576 = vmatmul.mubr.f32.gmra.mrb[6].mxu1 %v447_v61  ;;  %v449_v2 = vmul.f32 0.5, %v433_v59 }
 0x11e   : > { %v864_v63 = vpop.eup %863  ;;  %v450_v46 = vmul.f32 0.5, %v434_v62 }
 0x11f   : > { %v866_v0 = vpop.eup %865  ;;  %v435_v1 = vadd.f32 1.0, %v864_v63 }
 0x120   : > { %v436_v3 = vadd.f32 1.0, %v866_v0  ;;  %580 = vmatprep.mubr.f32.mxu1 %v450_v46 }
 0x121   : > { %581 = vmatmul.mubr.f32.gmra.mrb[8].mxu1 %v449_v2  ;;  %v451_v8 = vmul.f32 0.5, %v435_v1 }
 0x122   : > { %v868_v47 = vpop.eup %867  ;;  %v452_v4 = vmul.f32 0.5, %v436_v3 }
 0x123   : > { %v870_v5 = vpop.eup %869  ;;  %v437_v6 = vadd.f32 1.0, %v868_v47 }
 0x124   : > { %v438_v9 = vadd.f32 1.0, %v870_v5  ;;  %585 = vmatprep.mubr.f32.mxu1 %v452_v4 }
 0x125   : > { %586 = vmatmul.mubr.f32.gmra.mrb[10].mxu1 %v451_v8  ;;  %v453_v14 = vmul.f32 0.5, %v437_v6 }
 0x126   : > { %v872_v10 = vpop.eup %871  ;;  %v454_v11 = vmul.f32 0.5, %v438_v9 }
 0x127   : > { %v874_v12 = vpop.eup %873  ;;  %v439_v13 = vadd.f32 1.0, %v872_v10 }
 0x128   : > { %v440_v15 = vadd.f32 1.0, %v874_v12  ;;  %590 = vmatprep.mubr.f32.mxu1 %v454_v11 }
 0x129   : > { %591 = vmatmul.mubr.f32.gmra.mrb[12].mxu1 %v453_v14  ;;  %v455_v7 = vmul.f32 0.5, %v439_v13 }
 0x12a   : > { %v456_v16 = vmul.f32 0.5, %v440_v15 }
 0x12c   : > { %595 = vmatprep.mubr.f32.mxu1 %v456_v16 }
 0x12d   : > { %596 = vmatmul.mubr.f32.gmra.mrb[14].mxu1 %v455_v7 }
 0x1e4   : > { %v746_v17 = vpop.f32.mrb[0].mxu1 }
 0x1e5   : > { %v747_v19 = vpop.f32.mrb[1].mxu1 }
 0x1e6   : > { %v748_v21 = vadd.f32 %v747_v19, %v746_v17 }
 0x1e8   : > { %v563_v22 = vadd.f32 %v748_v21, %v1165_v18  ;;  %v749_v23 = vpop.f32.mrb[2].mxu1 }
 0x1e9   : > { %v750_v25 = vpop.f32.mrb[3].mxu1 }
 0x1ea   : > { %v601_v26 = vmax.f32 %v563_v22, 0.0  ;;  %v751_v27 = vadd.f32 %v750_v25, %v749_v23 }
 0x1ec   : > { %v613_v28 = vadd.f32 1.0, %v601_v26  ;;  %v568_v29 = vadd.f32 %v751_v27, %v1165_v18  ;;  %v752_v30 = vpop.f32.mrb[4].mxu1 }
 0x1ed   : > { %v753_v32 = vpop.f32.mrb[5].mxu1 }
 0x1ee   : > { %v621_v41 = vmul.f32 %v613_v28, %v613_v28  ;;  %v602_v33 = vmax.f32 %v568_v29, 0.0  ;;  %v754_v34 = vadd.f32 %v753_v32, %v752_v30 }
 0x1f0   : > { %v629_v35 = vsel %vm1170_vm0, %v601_v26, %v621_v41  ;;  %v614_v36 = vadd.f32 1.0, %v602_v33  ;;  %v573_v37 = vadd.f32 %v754_v34, %v1165_v18  ;;  %v755_v38 = vpop.f32.mrb[6].mxu1 }
 0x1f1   : > { %638 = vst.msk [vmem:[%s1179_s22] sm:$0xff] %vm637_vm1, %v629_v35  ;;  %v756_v39 = vpop.f32.mrb[7].mxu1 }
 0x1f2   : > { %v622_v40 = vmul.f32 %v614_v36, %v614_v36  ;;  %v603_v42 = vmax.f32 %v573_v37, 0.0  ;;  %v757_v43 = vadd.f32 %v756_v39, %v755_v38 }
 0x1f4   : > { %v630_v44 = vsel %vm1170_vm0, %v602_v33, %v622_v40  ;;  %v615_v45 = vadd.f32 1.0, %v603_v42  ;;  %v578_v48 = vadd.f32 %v757_v43, %v1165_v18  ;;  %v758_v49 = vpop.f32.mrb[8].mxu1 }
 0x1f5   : > { %639 = vst.msk [vmem:[%s1179_s22 + $0x8] sm:$0xff] %vm637_vm1, %v630_v44  ;;  %v759_v50 = vpop.f32.mrb[9].mxu1 }
 0x1f6   : > { %v623_v51 = vmul.f32 %v615_v45, %v615_v45  ;;  %v604_v52 = vmax.f32 %v578_v48, 0.0  ;;  %v760_v53 = vadd.f32 %v759_v50, %v758_v49 }
 0x1f8   : > { %v631_v54 = vsel %vm1170_vm0, %v603_v42, %v623_v51  ;;  %v616_v55 = vadd.f32 1.0, %v604_v52  ;;  %v583_v56 = vadd.f32 %v760_v53, %v1165_v18  ;;  %v761_v57 = vpop.f32.mrb[10].mxu1 }
 0x1f9   : > { %640 = vst.msk [vmem:[%s1179_s22 + $0x10] sm:$0xff] %vm637_vm1, %v631_v54  ;;  %v762_v58 = vpop.f32.mrb[11].mxu1 }
 0x1fa   : > { %v624_v59 = vmul.f32 %v616_v55, %v616_v55  ;;  %v605_v60 = vmax.f32 %v583_v56, 0.0  ;;  %v763_v61 = vadd.f32 %v762_v58, %v761_v57 }
 0x1fc   : > { %v632_v62 = vsel %vm1170_vm0, %v604_v52, %v624_v59  ;;  %v617_v63 = vadd.f32 1.0, %v605_v60  ;;  %v588_v46 = vadd.f32 %v763_v61, %v1165_v18  ;;  %v764_v0 = vpop.f32.mrb[12].mxu1 }
 0x1fd   : > { %641 = vst.msk [vmem:[%s1179_s22 + $0x18] sm:$0xff] %vm637_vm1, %v632_v62  ;;  %v765_v1 = vpop.f32.mrb[13].mxu1 }
 0x1fe   : > { %v625_v2 = vmul.f32 %v617_v63, %v617_v63  ;;  %v606_v3 = vmax.f32 %v588_v46, 0.0  ;;  %v766_v47 = vadd.f32 %v765_v1, %v764_v0 }
 0x200   : > { %v633_v4 = vsel %vm1170_vm0, %v605_v60, %v625_v2  ;;  %v618_v5 = vadd.f32 1.0, %v606_v3  ;;  %v593_v6 = vadd.f32 %v766_v47, %v1165_v18  ;;  %v767_v8 = vpop.f32.mrb[14].mxu1 }
 0x201   : > { %642 = vst.msk [vmem:[%s1179_s22 + $0x20] sm:$0xff] %vm637_vm1, %v633_v4  ;;  %v768_v9 = vpop.f32.mrb[15].mxu1 }
 0x202   : > { %v626_v10 = vmul.f32 %v618_v5, %v618_v5  ;;  %v607_v11 = vmax.f32 %v593_v6, 0.0  ;;  %v769_v12 = vadd.f32 %v768_v9, %v767_v8 }
 0x204   : > { %v634_v13 = vsel %vm1170_vm0, %v606_v3, %v626_v10  ;;  %v619_v14 = vadd.f32 1.0, %v607_v11  ;;  %v598_v15 = vadd.f32 %v769_v12, %v1165_v18 }
 0x205   : > { %643 = vst.msk [vmem:[%s1179_s22 + $0x28] sm:$0xff] %vm637_vm1, %v634_v13 }
 0x206   : > { %v627_v16 = vmul.f32 %v619_v14, %v619_v14  ;;  %v608_v7 = vmax.f32 %v598_v15, 0.0 }
 0x208   : > { %v635_v17 = vsel %vm1170_vm0, %v607_v11, %v627_v16  ;;  %v620_v19 = vadd.f32 1.0, %v608_v7 }
 0x209   : > { %644 = vst.msk [vmem:[%s1179_s22 + $0x30] sm:$0xff] %vm637_vm1, %v635_v17 }
 0x20a   : > { %v628_v20 = vmul.f32 %v620_v19, %v620_v19 }
 0x20c   : > { %v636_v21 = vsel %vm1170_vm0, %v608_v7, %v628_v20 }
 0x20d   : > { %645 = vst.msk [vmem:[%s1179_s22 + $0x38] sm:$0xff] %vm637_vm1, %v636_v21 }
 0x20e PF: > { %s15_s18 = sadd.s32 1, %s881_s18  }
 0x20f   : > { %p12_p4 = scmp.ge.s32.totalorder %s15_s18, 4  }
 0x211   :  { %14 = sbr.rel (!%p12_p4) target bundleno = 1 (0x1), region = 70 }

</bundles_post_ra>
